<compile_context>
chip_gen: v7x
topology: tpu7x:2x2x1
jax: 0.10.0
libtpu: 0.0.40
codegen_flags: <defaults>
</compile_context>

<pallas_src>
import jax
import jax.numpy as jnp
from jax.experimental import pallas as pl
from jax.experimental.pallas import tpu as pltpu


# ---------------------------------------------------------------------------
# Kernel
# ---------------------------------------------------------------------------
def autoencoder_kernel(x_ref, w1_ref, b1_ref, w2_ref, b2_ref, o_ref):
    x = x_ref[...]                                                # (TB, F)
    # encoder: Linear + ReLU  (MXU matmul, f32 accumulate)
    h = jnp.dot(x, w1_ref[...], preferred_element_type=jnp.float32)
    h = jnp.maximum(h + b1_ref[...], 0.0)                         # (TB, E)
    # decoder: Linear + Sigmoid
    y = jnp.dot(h.astype(w2_ref.dtype), w2_ref[...],
                preferred_element_type=jnp.float32)
    y = y + b2_ref[...]                                           # (TB, F)
    o_ref[...] = jax.nn.sigmoid(y).astype(o_ref.dtype)


# ---------------------------------------------------------------------------
# Tiling plan
# ---------------------------------------------------------------------------
def _round_up(n, m):
    return ((n + m - 1) // m) * m


_VMEM_TILE_BUDGET = 24 * 1024 * 1024   # conservative vs. v7x's 64 MiB physical VMEM


def _plan_tiling(B, F, E, itemsize):
    """Pick the batch tile TB and an honest VMEM limit.

    The budget counts everything the pipeline actually allocates:
      * streamed x and out tiles, double-buffered,
      * f32 intermediates h (TB, E) and pre-sigmoid y (TB, F),
      * resident weights / biases (assumed double-buffered, so the
        no-Buffered(1) fallback also fits).
    """
    sublane = max(8, 32 // itemsize)                 # 8 f32 / 16 bf16 / 32 int8
    resident = 2 * itemsize * (2 * F * E + E + F)    # w1,w2,b1,b2 (x2 buffers)
    per_row = 2 * 2 * F * itemsize + 4 * (E + F)     # x+out streams + f32 h,y
    avail = _VMEM_TILE_BUDGET - resident
    tb = avail // per_row if avail > 0 else sublane
    tb = max(sublane, min(8192, (tb // sublane) * sublane))
    if B <= sublane:
        tb = B                                       # single full-extent tile
    else:
        # Keep >= 2 grid steps so v7x's two TensorCores both get work.
        tb = min(tb, _round_up((B + 1) // 2, sublane))

    footprint = resident + tb * per_row
    vmem_limit = int(min(56 * 2**20, max(32 * 2**20, 2 * footprint)))
    return tb, vmem_limit


# ---------------------------------------------------------------------------
# Wrapper
# ---------------------------------------------------------------------------
def autoencoder_forward(x, w1, b1, w2, b2):
    B, F = x.shape
    E = w1.shape[1]
    assert w1.shape == (F, E) and w2.shape == (E, F)
    assert b1.shape == (1, E) and b2.shape == (1, F)

    itemsize = x.dtype.itemsize
    TB, vmem_limit = _plan_tiling(B, F, E, itemsize)
    grid = (pl.cdiv(B, TB),)          # Pallas masks the ragged last batch tile

    cost = pl.CostEstimate(
        flops=4 * B * F * E,                          # two GEMMs
        transcendentals=B * F,                        # sigmoid exp
        bytes_accessed=itemsize * (2 * B * F + 2 * F * E + E + F),
    )

    def build(single_buffer_weights):
        def resident(shape):
            idx = lambda i: (0,) * len(shape)
            if single_buffer_weights:
                # Constant index_map => VMEM-resident; request a single buffer
                # to halve the weight footprint (matters on v7x, 64 MiB VMEM).
                return pl.BlockSpec(shape, idx, pipeline_mode=pl.Buffered(1))
            return pl.BlockSpec(shape, idx)

        return pl.pallas_call(
            autoencoder_kernel,
            out_shape=jax.ShapeDtypeStruct((B, F), x.dtype),
            grid=grid,
            in_specs=[
                pl.BlockSpec((TB, F), lambda i: (i, 0)),   # x: streamed per tile
                resident((F, E)),                          # w1: VMEM-resident
                resident((1, E)),                          # b1
                resident((E, F)),                          # w2
                resident((1, F)),                          # b2
            ],
            out_specs=pl.BlockSpec((TB, F), lambda i: (i, 0)),
            compiler_params=pltpu.CompilerParams(
                dimension_semantics=("parallel",),   # shard batch tiles across TCs
                vmem_limit_bytes=vmem_limit,
            ),
            cost_estimate=cost,
        )

    # TODO(synk): add a weight-tiled (reduction-axis) fallback for models whose
    # resident weights exceed the per-TensorCore VMEM budget (esp. v7x, 64 MiB).
    try:
        return build(single_buffer_weights=True)(x, w1, b1, w2, b2)
    except Exception:
        # pl.Buffered(1) unsupported on this jax version -> default buffering.
        return build(single_buffer_weights=False)(x, w1, b1, w2, b2)


# ---------------------------------------------------------------------------
# Params & reference
# ---------------------------------------------------------------------------
def init_params(key, input_size, encoding_size, dtype=jnp.float32):
    """nn.Linear-style init (uniform +-1/sqrt(fan_in)); weights stored (in, out)."""
    k1, k2, k3, k4 = jax.random.split(key, 4)
    bound1 = 1.0 / jnp.sqrt(input_size)
    w1 = jax.random.uniform(k1, (input_size, encoding_size), dtype, -bound1, bound1)
    b1 = jax.random.uniform(k2, (1, encoding_size), dtype, -bound1, bound1)
    bound2 = 1.0 / jnp.sqrt(encoding_size)
    w2 = jax.random.uniform(k3, (encoding_size, input_size), dtype, -bound2, bound2)
    b2 = jax.random.uniform(k4, (1, input_size), dtype, -bound2, bound2)
    return w1, b1, w2, b2


def autoencoder_ref(x, w1, b1, w2, b2):
    h = jnp.maximum(x @ w1 + b1, 0.0)
    return jax.nn.sigmoid(h @ w2 + b2)


# ---------------------------------------------------------------------------
# Main
# ---------------------------------------------------------------------------
if __name__ == "__main__":
    batch = 8
    input_size = 64        # stands in for scaled_features.shape[1]
    encoding_size = 32

    key = jax.random.PRNGKey(0)
    kx, kp = jax.random.split(key)
    x = jax.random.normal(kx, (batch, input_size), jnp.float32)
    w1, b1, w2, b2 = init_params(kp, input_size, encoding_size)

    out = autoencoder_forward(x, w1, b1, w2, b2)
    out = jax.block_until_ready(out)

    ref = autoencoder_ref(x, w1, b1, w2, b2)
    assert out.shape == (batch, input_size)
    assert jnp.allclose(out, ref, atol=1e-5, rtol=1e-5)

    print("KERNEL_OK")
</pallas_src>

<mosaic_0001>
module attributes {stable_mosaic.version = 11 : i64} {
  func.func @autoencoder_kernel(%arg0: i32, %arg1: memref<8x64xf32, #tpu.memory_space<vmem>>, %arg2: memref<64x32xf32, #tpu.memory_space<vmem>>, %arg3: memref<1x32xf32, #tpu.memory_space<vmem>>, %arg4: memref<32x64xf32, #tpu.memory_space<vmem>>, %arg5: memref<1x64xf32, #tpu.memory_space<vmem>>, %arg6: memref<8x64xf32, #tpu.memory_space<vmem>>) attributes {dimension_semantics = [#tpu.dimension_semantics<parallel>], iteration_bounds = array<i64: 1>, scalar_prefetch = 0 : i64, scratch_operands = 0 : i64, tpu.core_type = #tpu.core_type<tc>, window_params = [{transform_indices = @transform_0, window_bounds = array<i64: 8, 64>}, {pipeline_mode = #tpu.pipeline_mode<synchronous>, transform_indices = @transform_1, window_bounds = array<i64: 64, 32>}, {pipeline_mode = #tpu.pipeline_mode<synchronous>, transform_indices = @transform_2, window_bounds = array<i64: 1, 32>}, {pipeline_mode = #tpu.pipeline_mode<synchronous>, transform_indices = @transform_3, window_bounds = array<i64: 32, 64>}, {pipeline_mode = #tpu.pipeline_mode<synchronous>, transform_indices = @transform_4, window_bounds = array<i64: 1, 64>}, {transform_indices = @transform_5, window_bounds = array<i64: 8, 64>}]} {
    %c0 = arith.constant 0 : index
    %c0_0 = arith.constant 0 : index
    %0 = vector.load %arg1[%c0, %c0_0] : memref<8x64xf32, #tpu.memory_space<vmem>>, vector<8x64xf32>
    %c0_1 = arith.constant 0 : index
    %c0_2 = arith.constant 0 : index
    %1 = vector.load %arg2[%c0_1, %c0_2] : memref<64x32xf32, #tpu.memory_space<vmem>>, vector<64x32xf32>
    %cst = arith.constant dense<0.000000e+00> : vector<8x32xf32>
    %2 = tpu.matmul %0, %1, %cst {dimension_numbers = #tpu.dot_dimension_numbers<[1], [0], [0], [1], [0, 0, 1, 1], [], []>} : vector<8x64xf32>, vector<64x32xf32>, vector<8x32xf32> -> vector<8x32xf32>
    %c0_3 = arith.constant 0 : index
    %c0_4 = arith.constant 0 : index
    %3 = vector.load %arg3[%c0_3, %c0_4] : memref<1x32xf32, #tpu.memory_space<vmem>>, vector<1x32xf32>
    %4 = vector.broadcast %3 : vector<1x32xf32> to vector<8x32xf32>
    %5 = arith.addf %2, %4 : vector<8x32xf32>
    %cst_5 = arith.constant 0.000000e+00 : f32
    %6 = vector.broadcast %cst_5 : f32 to vector<8x32xf32>
    %7 = arith.maximumf %5, %6 : vector<8x32xf32>
    %c0_6 = arith.constant 0 : index
    %c0_7 = arith.constant 0 : index
    %8 = vector.load %arg4[%c0_6, %c0_7] : memref<32x64xf32, #tpu.memory_space<vmem>>, vector<32x64xf32>
    %cst_8 = arith.constant dense<0.000000e+00> : vector<8x64xf32>
    %9 = tpu.matmul %7, %8, %cst_8 {dimension_numbers = #tpu.dot_dimension_numbers<[1], [0], [0], [1], [0, 0, 1, 1], [], []>} : vector<8x32xf32>, vector<32x64xf32>, vector<8x64xf32> -> vector<8x64xf32>
    %c0_9 = arith.constant 0 : index
    %c0_10 = arith.constant 0 : index
    %10 = vector.load %arg5[%c0_9, %c0_10] : memref<1x64xf32, #tpu.memory_space<vmem>>, vector<1x64xf32>
    %11 = vector.broadcast %10 : vector<1x64xf32> to vector<8x64xf32>
    %12 = arith.addf %9, %11 : vector<8x64xf32>
    %13 = arith.negf %12 : vector<8x64xf32>
    %14 = math.exp %13 : vector<8x64xf32>
    %cst_11 = arith.constant 1.000000e+00 : f32
    %15 = vector.broadcast %cst_11 : f32 to vector<8x64xf32>
    %16 = arith.addf %15, %14 : vector<8x64xf32>
    %17 = arith.divf %15, %16 : vector<8x64xf32>
    %c0_12 = arith.constant 0 : index
    %c0_13 = arith.constant 0 : index
    %18 = vector.load %arg6[%c0_12, %c0_13] : memref<8x64xf32, #tpu.memory_space<vmem>>, vector<8x64xf32>
    tpu.vector_store %arg6[%c0_12, %c0_13], %17 {strides = array<i32>} : memref<8x64xf32, #tpu.memory_space<vmem>>, vector<8x64xf32>,
    return
  }
  func.func @transform_0(%arg0: i32) -> (i32, i32) {
    %c0_i32 = arith.constant 0 : i32
    %c0_i32_0 = arith.constant 0 : i32
    return %arg0, %c0_i32 : i32, i32
  }
  func.func @transform_1(%arg0: i32) -> (i32, i32) {
    %c0_i32 = arith.constant 0 : i32
    %c0_i32_0 = arith.constant 0 : i32
    %c0_i32_1 = arith.constant 0 : i32
    return %c0_i32, %c0_i32_0 : i32, i32
  }
  func.func @transform_2(%arg0: i32) -> (i32, i32) {
    %c0_i32 = arith.constant 0 : i32
    %c0_i32_0 = arith.constant 0 : i32
    %c0_i32_1 = arith.constant 0 : i32
    return %c0_i32, %c0_i32_0 : i32, i32
  }
  func.func @transform_3(%arg0: i32) -> (i32, i32) {
    %c0_i32 = arith.constant 0 : i32
    %c0_i32_0 = arith.constant 0 : i32
    %c0_i32_1 = arith.constant 0 : i32
    return %c0_i32, %c0_i32_0 : i32, i32
  }
  func.func @transform_4(%arg0: i32) -> (i32, i32) {
    %c0_i32 = arith.constant 0 : i32
    %c0_i32_0 = arith.constant 0 : i32
    %c0_i32_1 = arith.constant 0 : i32
    return %c0_i32, %c0_i32_0 : i32, i32
  }
  func.func @transform_5(%arg0: i32) -> (i32, i32) {
    %c0_i32 = arith.constant 0 : i32
    %c0_i32_0 = arith.constant 0 : i32
    return %arg0, %c0_i32 : i32, i32
  }
}

module attributes {stable_mosaic.version = 11 : i64} {
  func.func @autoencoder_kernel(%arg0: i32, %arg1: memref<8x64xf32, #tpu.memory_space<vmem>>, %arg2: memref<64x32xf32, #tpu.memory_space<vmem>>, %arg3: memref<1x32xf32, #tpu.memory_space<vmem>>, %arg4: memref<32x64xf32, #tpu.memory_space<vmem>>, %arg5: memref<1x64xf32, #tpu.memory_space<vmem>>, %arg6: memref<8x64xf32, #tpu.memory_space<vmem>>) attributes {dimension_semantics = [#tpu.dimension_semantics<parallel>], iteration_bounds = array<i64: 1>, scalar_prefetch = 0 : i64, scratch_operands = 0 : i64, tpu.core_type = #tpu.core_type<tc>, window_params = [{transform_indices = @transform_0, window_bounds = array<i64: 8, 64>}, {pipeline_mode = #tpu.pipeline_mode<synchronous>, transform_indices = @transform_1, window_bounds = array<i64: 64, 32>}, {pipeline_mode = #tpu.pipeline_mode<synchronous>, transform_indices = @transform_2, window_bounds = array<i64: 1, 32>}, {pipeline_mode = #tpu.pipeline_mode<synchronous>, transform_indices = @transform_3, window_bounds = array<i64: 32, 64>}, {pipeline_mode = #tpu.pipeline_mode<synchronous>, transform_indices = @transform_4, window_bounds = array<i64: 1, 64>}, {transform_indices = @transform_5, window_bounds = array<i64: 8, 64>}]} {
    %c0 = arith.constant 0 : index
    %c0_0 = arith.constant 0 : index
    %0 = vector.load %arg1[%c0, %c0_0] : memref<8x64xf32, #tpu.memory_space<vmem>>, vector<8x64xf32>
    %c0_1 = arith.constant 0 : index
    %c0_2 = arith.constant 0 : index
    %1 = vector.load %arg2[%c0_1, %c0_2] : memref<64x32xf32, #tpu.memory_space<vmem>>, vector<64x32xf32>
    %cst = arith.constant dense<0.000000e+00> : vector<8x32xf32>
    %2 = tpu.matmul %0, %1, %cst {dimension_numbers = #tpu.dot_dimension_numbers<[1], [0], [0], [1], [0, 0, 1, 1], [], []>} : vector<8x64xf32>, vector<64x32xf32>, vector<8x32xf32> -> vector<8x32xf32>
    %c0_3 = arith.constant 0 : index
    %c0_4 = arith.constant 0 : index
    %3 = vector.load %arg3[%c0_3, %c0_4] : memref<1x32xf32, #tpu.memory_space<vmem>>, vector<1x32xf32>
    %4 = vector.broadcast %3 : vector<1x32xf32> to vector<8x32xf32>
    %5 = arith.addf %2, %4 : vector<8x32xf32>
    %cst_5 = arith.constant 0.000000e+00 : f32
    %6 = vector.broadcast %cst_5 : f32 to vector<8x32xf32>
    %7 = arith.maximumf %5, %6 : vector<8x32xf32>
    %c0_6 = arith.constant 0 : index
    %c0_7 = arith.constant 0 : index
    %8 = vector.load %arg4[%c0_6, %c0_7] : memref<32x64xf32, #tpu.memory_space<vmem>>, vector<32x64xf32>
    %cst_8 = arith.constant dense<0.000000e+00> : vector<8x64xf32>
    %9 = tpu.matmul %7, %8, %cst_8 {dimension_numbers = #tpu.dot_dimension_numbers<[1], [0], [0], [1], [0, 0, 1, 1], [], []>} : vector<8x32xf32>, vector<32x64xf32>, vector<8x64xf32> -> vector<8x64xf32>
    %c0_9 = arith.constant 0 : index
    %c0_10 = arith.constant 0 : index
    %10 = vector.load %arg5[%c0_9, %c0_10] : memref<1x64xf32, #tpu.memory_space<vmem>>, vector<1x64xf32>
    %11 = vector.broadcast %10 : vector<1x64xf32> to vector<8x64xf32>
    %12 = arith.addf %9, %11 : vector<8x64xf32>
    %13 = arith.negf %12 : vector<8x64xf32>
    %14 = math.exp %13 : vector<8x64xf32>
    %cst_11 = arith.constant 1.000000e+00 : f32
    %15 = vector.broadcast %cst_11 : f32 to vector<8x64xf32>
    %16 = arith.addf %15, %14 : vector<8x64xf32>
    %17 = arith.divf %15, %16 : vector<8x64xf32>
    %c0_12 = arith.constant 0 : index
    %c0_13 = arith.constant 0 : index
    %18 = vector.load %arg6[%c0_12, %c0_13] : memref<8x64xf32, #tpu.memory_space<vmem>>, vector<8x64xf32>
    tpu.vector_store %arg6[%c0_12, %c0_13], %17 {strides = array<i32>} : memref<8x64xf32, #tpu.memory_space<vmem>>, vector<8x64xf32>,
    return
  }
  func.func @transform_0(%arg0: i32) -> (i32, i32) {
    %c0_i32 = arith.constant 0 : i32
    %c0_i32_0 = arith.constant 0 : i32
    return %arg0, %c0_i32 : i32, i32
  }
  func.func @transform_1(%arg0: i32) -> (i32, i32) {
    %c0_i32 = arith.constant 0 : i32
    %c0_i32_0 = arith.constant 0 : i32
    %c0_i32_1 = arith.constant 0 : i32
    return %c0_i32, %c0_i32_0 : i32, i32
  }
  func.func @transform_2(%arg0: i32) -> (i32, i32) {
    %c0_i32 = arith.constant 0 : i32
    %c0_i32_0 = arith.constant 0 : i32
    %c0_i32_1 = arith.constant 0 : i32
    return %c0_i32, %c0_i32_0 : i32, i32
  }
  func.func @transform_3(%arg0: i32) -> (i32, i32) {
    %c0_i32 = arith.constant 0 : i32
    %c0_i32_0 = arith.constant 0 : i32
    %c0_i32_1 = arith.constant 0 : i32
    return %c0_i32, %c0_i32_0 : i32, i32
  }
  func.func @transform_4(%arg0: i32) -> (i32, i32) {
    %c0_i32 = arith.constant 0 : i32
    %c0_i32_0 = arith.constant 0 : i32
    %c0_i32_1 = arith.constant 0 : i32
    return %c0_i32, %c0_i32_0 : i32, i32
  }
  func.func @transform_5(%arg0: i32) -> (i32, i32) {
    %c0_i32 = arith.constant 0 : i32
    %c0_i32_0 = arith.constant 0 : i32
    return %arg0, %c0_i32 : i32, i32
  }
}

</mosaic_0001>

<bundles_post_ra>
// kernel: tpu_custom_call.1
= control target key start
LH: loop header
LB: loop body
LE: loop exit
PB: predicated region body
PF: predicated region fallthrough
CT: control target
= control target key end

     0   :  { %v317_v3 = vmov 0.0|0.0   ;;  %vm318_vm0 = vmmov 0   ;;  %v319_v6 = vmov 0.0   ;;  %s410_s0 = inlined_call_operand.vmem [shape: f32[8,64], index: 0, kind: input, shape index: {}]   ;;  %s411_s1 = inlined_call_operand.vmem [shape: f32[64,32], index: 1, kind: input, shape index: {}]   ;;  %s412_s2 = inlined_call_operand.vmem [shape: f32[1,32], index: 2, kind: input, shape index: {}]   ;;  %s413_s3 = inlined_call_operand.vmem [shape: f32[32,64], index: 3, kind: input, shape index: {}]   ;;  %s414_s4 = inlined_call_operand.vmem [shape: f32[1,64], index: 4, kind: input, shape index: {}]   ;;  %s415_s5 = inlined_call_operand.hbm [shape: f32[8,64], index: 5, kind: output, shape index: {}]  }
   0x1   :  { %v22_v0 = vld [vmem:[%s411_s1] sm:$0xff]  ;;  %v23_v1 = vld [vmem:[%s411_s1 + $0x8] sm:$0xff]  ;;  %v24_v2 = vld [vmem:[%s411_s1 + $0x10] sm:$0xff]  ;;  %267 = vmatprep.subr.bf16.mxu0 %v317_v3  ;;  %253 = vmatprep.mubr.msk.f32.mxu0 %vm318_vm0, %v319_v6 }
   0x2   :  { %v268_v4 = vpack.c.bf16 %v23_v1, %v22_v0  ;;  %v25_v5 = vld [vmem:[%s411_s1 + $0x18] sm:$0xff]  ;;  %279 = vmatprep.subr.bf16.mxu1 %v317_v3  ;;  %264 = vmatprep.mubr.msk.f32.mxu1 %vm318_vm0, %v319_v6  ;;  %v112_v8 = vld [vmem:[%s413_s3] sm:$0xff]  ;;  %v113_v9 = vld [vmem:[%s413_s3 + $0x8] sm:$0xff] }
   0x3   :  { %v271_v7 = vpack.c.bf16 %v25_v5, %v24_v2  ;;  %v26_v10 = vld [vmem:[%s411_s1 + $0x20] sm:$0xff]  ;;  %v27_v11 = vld [vmem:[%s411_s1 + $0x28] sm:$0xff]  ;;  %v280_v12 = vpack.c.bf16 %v113_v9, %v112_v8 }
   0x4   :  { %269 = vmatpush3.bf16.msra.mxu0 %v268_v4 }
   0x5   :  { %270 = vmatprep.subr.bf16.mxu0 %v317_v3 }
   0x6   :  { %10 = vsyncpa [#allocation3], 0  ;;  %281 = vmatpush3.bf16.msra.mxu1 %v280_v12  ;;  %v274_v13 = vpack.c.bf16 %v27_v11, %v26_v10  ;;  %v28_v14 = vld [vmem:[%s411_s1 + $0x30] sm:$0xff]  ;;  %v29_v15 = vld [vmem:[%s411_s1 + $0x38] sm:$0xff]  ;;  %vm37_vm1 = vcmask 523264   ;;  %vm123_vm2 = vcmask 261120  }
   0x7   :  { %282 = vmatprep.subr.bf16.mxu1 %v317_v3  ;;  %v277_v16 = vpack.c.bf16 %v29_v15, %v28_v14  ;;  %v21_v17 = vld [vmem:[%s410_s0] sm:$0xff]  ;;  %v114_v18 = vld [vmem:[%s413_s3 + $0x10] sm:$0xff]  ;;  %v115_v19 = vld [vmem:[%s413_s3 + $0x18] sm:$0xff]  ;;  %s320_s3 = smov [#allocation2]  }
   0x8   :  { %272 = vmatpush3.bf16.msra.mxu0 %v271_v7  ;;  %v283_v20 = vpack.c.bf16 %v115_v19, %v114_v18  ;;  %v218_v21 = vld [vmem:[%s412_s2] ss:$0 sm:$0xff]  ;;  %s210_s2 = sshll.u32 %s320_s3, 4  ;;  %s211_s2 = int_to_ptr.vmem [resolvable:$true] %s210_s2 }
   0x9   :  { %273 = vmatprep.subr.bf16.mxu0 %v317_v3  ;;  %v220_v26 = vld [vmem:[%s414_s4] ss:$0 sm:$0xff]  ;;  %s293_s21 = scalar_lea.vmem %s211_s2, 128  ;;  %p298_p1 = scmp.lt.s32.totalorder %s211_s2, %s211_s2 }
   0xa   :  { %284 = vmatpush3.bf16.msra.mxu1 %v283_v20  ;;  %p294_p0 = scmp.ne.s32.totalorder %s211_s2, %s293_s21  ;;  %p299_p2 = scmp.lt.s32.totalorder %s293_s21, %s293_s21 }
   0xc   :  { %275 = vmatpush3.bf16.msra.mxu0 %v274_v13  ;;  %p300_p3 = por %p299_p2, %p298_p1 }
   0xd   :  { %276 = vmatprep.subr.bf16.mxu0 %v317_v3 }
   0xe   :  { %p301_p4 = pnand %p300_p3, %p294_p0 }
  0x10   :  { %278 = vmatpush3.bf16.msra.mxu0 %v277_v16 }
  0x13   :  { %254 = vmatmul.mubr.msk.f32.vlgmr.msra.gmra.mrb[0].mxu0 %vm37_vm1, %v21_v17 }
  0xe6   :  { %v107_v22 = vpop.f32.mrb[0].mxu0 }
  0xe7   :  { %v108_v23 = vadd.f32 %v218_v21, %v107_v22  ;;  %v255_v24 = vpop.f32.mrb[1].mxu0 }
  0xe9   :  { %v111_v25 = vmax.f32 %v108_v23, 0.0 }
  0xeb   :  { %265 = vmatmul.mubr.msk.f32.vlgmr.msra.gmra.mrb[0].mxu1 %vm123_vm2, %v111_v25 }
 0x1be   :  { %v193_v27 = vpop.f32.mrb[0].mxu1 }
 0x1bf   :  { %v194_v28 = vadd.f32 %v220_v26, %v193_v27  ;;  %v266_v29 = vpop.f32.mrb[1].mxu1 }
 0x1c1   :  { %v222_v30 = vmul.f32 -1.442695, %v194_v28 }
 0x1c3   :  { %289 = vpow2.f32 %v222_v30 }
 0x1cd   :  { %v290_v31 = vpop.eup %289 }
 0x1ce   :  { %v200_v32 = vadd.f32 1.0, %v290_v31 }
 0x1d0   :  { %291 = vrcp.f32 %v200_v32 }
 0x1da   :  { %v292_v33 = vpop.eup %291 }
 0x1db   :  { %203 = vst.msk [vmem:[#allocation2] sm:$0xff] %vm37_vm1, %v292_v33 }
 0x1dc   :  { %304 = shalt.err (!%p301_p4)
}
 0x1dd   :  { %s305_s23 = scalar_lea.hbm %s415_s5, 128 }
 0x1de   :  { %p306_p5 = scmp.ne.s32.totalorder %s415_s5, %s305_s23  ;;  %p309_p6 = scmp.lt.u32.totalorder %s305_s23, %s415_s5 }
 0x1e0   :  { %p311_p7 = pnand %p309_p6, %p306_p5 }
 0x1e2   :  { %314 = shalt.err (!%p311_p7)
}
 0x1e3   :  { %213 = dma.vmem_to_hbm [thread:$0]  %s211_s2, 128, %s415_s5, [#allocation3]  }
 0x1e4   :  { %315 = dma.done.wait [#allocation3], 128  }
 0x1e5   :  { %316 = vsyncadd [#allocation3], 4294967168 }
 0x1e6   :  { %217 = vsyncpa [#allocation3], 1 }

// kernel: tpu_custom_call.1
= control target key start
LH: loop header
LB: loop body
LE: loop exit
PB: predicated region body
PF: predicated region fallthrough
CT: control target
= control target key end

     0   :  { %v317_v3 = vmov 0.0|0.0   ;;  %vm318_vm0 = vmmov 0   ;;  %v319_v6 = vmov 0.0   ;;  %s410_s0 = inlined_call_operand.vmem [shape: f32[8,64], index: 0, kind: input, shape index: {}]   ;;  %s411_s1 = inlined_call_operand.vmem [shape: f32[64,32], index: 1, kind: input, shape index: {}]   ;;  %s412_s2 = inlined_call_operand.vmem [shape: f32[1,32], index: 2, kind: input, shape index: {}]   ;;  %s413_s3 = inlined_call_operand.vmem [shape: f32[32,64], index: 3, kind: input, shape index: {}]   ;;  %s414_s4 = inlined_call_operand.vmem [shape: f32[1,64], index: 4, kind: input, shape index: {}]   ;;  %s415_s5 = inlined_call_operand.hbm [shape: f32[8,64], index: 5, kind: output, shape index: {}]  }
   0x1   :  { %v22_v0 = vld [vmem:[%s411_s1] sm:$0xff]  ;;  %v23_v1 = vld [vmem:[%s411_s1 + $0x8] sm:$0xff]  ;;  %v24_v2 = vld [vmem:[%s411_s1 + $0x10] sm:$0xff]  ;;  %267 = vmatprep.subr.bf16.mxu0 %v317_v3  ;;  %253 = vmatprep.mubr.msk.f32.mxu0 %vm318_vm0, %v319_v6 }
   0x2   :  { %v268_v4 = vpack.c.bf16 %v23_v1, %v22_v0  ;;  %v25_v5 = vld [vmem:[%s411_s1 + $0x18] sm:$0xff]  ;;  %279 = vmatprep.subr.bf16.mxu1 %v317_v3  ;;  %264 = vmatprep.mubr.msk.f32.mxu1 %vm318_vm0, %v319_v6  ;;  %v112_v8 = vld [vmem:[%s413_s3] sm:$0xff]  ;;  %v113_v9 = vld [vmem:[%s413_s3 + $0x8] sm:$0xff] }
   0x3   :  { %v271_v7 = vpack.c.bf16 %v25_v5, %v24_v2  ;;  %v26_v10 = vld [vmem:[%s411_s1 + $0x20] sm:$0xff]  ;;  %v27_v11 = vld [vmem:[%s411_s1 + $0x28] sm:$0xff]  ;;  %v280_v12 = vpack.c.bf16 %v113_v9, %v112_v8 }
   0x4   :  { %269 = vmatpush3.bf16.msra.mxu0 %v268_v4 }
   0x5   :  { %270 = vmatprep.subr.bf16.mxu0 %v317_v3 }
   0x6   :  { %10 = vsyncpa [#allocation3], 0  ;;  %281 = vmatpush3.bf16.msra.mxu1 %v280_v12  ;;  %v274_v13 = vpack.c.bf16 %v27_v11, %v26_v10  ;;  %v28_v14 = vld [vmem:[%s411_s1 + $0x30] sm:$0xff]  ;;  %v29_v15 = vld [vmem:[%s411_s1 + $0x38] sm:$0xff]  ;;  %vm37_vm1 = vcmask 523264   ;;  %vm123_vm2 = vcmask 261120  }
   0x7   :  { %282 = vmatprep.subr.bf16.mxu1 %v317_v3  ;;  %v277_v16 = vpack.c.bf16 %v29_v15, %v28_v14  ;;  %v21_v17 = vld [vmem:[%s410_s0] sm:$0xff]  ;;  %v114_v18 = vld [vmem:[%s413_s3 + $0x10] sm:$0xff]  ;;  %v115_v19 = vld [vmem:[%s413_s3 + $0x18] sm:$0xff]  ;;  %s320_s3 = smov [#allocation2]  }
   0x8   :  { %272 = vmatpush3.bf16.msra.mxu0 %v271_v7  ;;  %v283_v20 = vpack.c.bf16 %v115_v19, %v114_v18  ;;  %v218_v21 = vld [vmem:[%s412_s2] ss:$0 sm:$0xff]  ;;  %s210_s2 = sshll.u32 %s320_s3, 4  ;;  %s211_s2 = int_to_ptr.vmem [resolvable:$true] %s210_s2 }
   0x9   :  { %273 = vmatprep.subr.bf16.mxu0 %v317_v3  ;;  %v220_v26 = vld [vmem:[%s414_s4] ss:$0 sm:$0xff]  ;;  %s293_s21 = scalar_lea.vmem %s211_s2, 128  ;;  %p298_p1 = scmp.lt.s32.totalorder %s211_s2, %s211_s2 }
   0xa   :  { %284 = vmatpush3.bf16.msra.mxu1 %v283_v20  ;;  %p294_p0 = scmp.ne.s32.totalorder %s211_s2, %s293_s21  ;;  %p299_p2 = scmp.lt.s32.totalorder %s293_s21, %s293_s21 }
   0xc   :  { %275 = vmatpush3.bf16.msra.mxu0 %v274_v13  ;;  %p300_p3 = por %p299_p2, %p298_p1 }
   0xd   :  { %276 = vmatprep.subr.bf16.mxu0 %v317_v3 }
   0xe   :  { %p301_p4 = pnand %p300_p3, %p294_p0 }
  0x10   :  { %278 = vmatpush3.bf16.msra.mxu0 %v277_v16 }
  0x13   :  { %254 = vmatmul.mubr.msk.f32.vlgmr.msra.gmra.mrb[0].mxu0 %vm37_vm1, %v21_v17 }
  0xe6   :  { %v107_v22 = vpop.f32.mrb[0].mxu0 }
  0xe7   :  { %v108_v23 = vadd.f32 %v218_v21, %v107_v22  ;;  %v255_v24 = vpop.f32.mrb[1].mxu0 }
  0xe9   :  { %v111_v25 = vmax.f32 %v108_v23, 0.0 }
  0xeb   :  { %265 = vmatmul.mubr.msk.f32.vlgmr.msra.gmra.mrb[0].mxu1 %vm123_vm2, %v111_v25 }
 0x1be   :  { %v193_v27 = vpop.f32.mrb[0].mxu1 }
 0x1bf   :  { %v194_v28 = vadd.f32 %v220_v26, %v193_v27  ;;  %v266_v29 = vpop.f32.mrb[1].mxu1 }
 0x1c1   :  { %v222_v30 = vmul.f32 -1.442695, %v194_v28 }
 0x1c3   :  { %289 = vpow2.f32 %v222_v30 }
 0x1cd   :  { %v290_v31 = vpop.eup %289 }
 0x1ce   :  { %v200_v32 = vadd.f32 1.0, %v290_v31 }
 0x1d0   :  { %291 = vrcp.f32 %v200_v32 }
 0x1da   :  { %v292_v33 = vpop.eup %291 }
 0x1db   :  { %203 = vst.msk [vmem:[#allocation2] sm:$0xff] %vm37_vm1, %v292_v33 }
 0x1dc   :  { %304 = shalt.err (!%p301_p4)
}
 0x1dd   :  { %s305_s23 = scalar_lea.hbm %s415_s5, 128 }
 0x1de   :  { %p306_p5 = scmp.ne.s32.totalorder %s415_s5, %s305_s23  ;;  %p309_p6 = scmp.lt.u32.totalorder %s305_s23, %s415_s5 }
 0x1e0   :  { %p311_p7 = pnand %p309_p6, %p306_p5 }
 0x1e2   :  { %314 = shalt.err (!%p311_p7)
}
 0x1e3   :  { %213 = dma.vmem_to_hbm [thread:$0]  %s211_s2, 128, %s415_s5, [#allocation3]  }
 0x1e4   :  { %315 = dma.done.wait [#allocation3], 128  }
 0x1e5   :  { %316 = vsyncadd [#allocation3], 4294967168 }
 0x1e6   :  { %217 = vsyncpa [#allocation3], 1 }

</bundles_post_ra>
